<compile_context>
chip_gen: v6e
topology: v6e:2x2x1
jax: 0.10.0
libtpu: 0.0.40
codegen_flags: <defaults>
</compile_context>

<pallas_src>
import jax
import jax.numpy as jnp
from jax.experimental import pallas as pl
from jax.experimental.pallas import tpu as pltpu


# Tile cap: 512^2 f32 output tile = 1 MiB (2 MiB double-buffered) -- comfortably
# inside the default scoped VMEM on v5e/v6e/v7x.  (v6e could take 1024.)
_TILE_CAP = 512


def _round_up(x, m):
    return (x + m - 1) // m * m


# ---------------------------------------------------------------------------
# Stage 1 (row-tiled):
#   out    = [x | pre-relu logits] = R @ W_r + T @ W_t + b    (single fused GEMM,
#            weights pre-split along the input dim -> no concat(R,T) in HBM)
#   x      = out[:, :feature_dim]
#   logits = relu(out[:, feature_dim:])
# ---------------------------------------------------------------------------
def _embed_kernel(r_ref, t_ref, wr_ref, wt_ref, b_ref, x_ref, logits_ref):
    out = jnp.dot(r_ref[...], wr_ref[...], preferred_element_type=jnp.float32)
    out = out + jnp.dot(t_ref[...], wt_ref[...], preferred_element_type=jnp.float32)
    out = out + b_ref[...]
    fd = x_ref.shape[1]
    # TODO(synk): x / logits last dims (4 / 16) are < 128 so these stores are
    # masked; negligible next to the (N, N) adjacency stage.
    x_ref[...] = out[:, :fd].astype(x_ref.dtype)
    logits_ref[...] = jnp.maximum(out[:, fd:], 0.0).astype(logits_ref.dtype)


# ---------------------------------------------------------------------------
# Stage 2 (2-D grid over A tiles): per (tile, tile) output tile
#   adj = logits[i-tile] @ logits[j-tile]^T      (trans-b contraction, no .T)
#   A   = 1 / (1 + e * exp(-adj)),  e = -log(u) ~ Exp(1)
# which equals sigmoid(-log(-log u) + adj) with tau == 1 folded away.
# ---------------------------------------------------------------------------
def _adj_denominator(li, lj, e):
    adj = jax.lax.dot_general(
        li, lj,
        dimension_numbers=(((1,), (1,)), ((), ())),   # contract the h_dim2 axes
        preferred_element_type=jnp.float32)
    return 1.0 + e * jnp.exp(-adj)


def _adj_kernel_tpu(seed_ref, li_ref, lj_ref, a_ref):
    """TPU path: Exp(1) noise drawn from the in-kernel hardware PRNG."""
    i = pl.program_id(0)
    j = pl.program_id(1)
    # Deterministic per-tile seed -> correct under "parallel" megacore sharding.
    pltpu.prng_seed(seed_ref[0] + i * pl.num_programs(1) + j)

    raw = pltpu.prng_random_bits(a_ref.shape)
    bits = raw if raw.dtype == jnp.uint32 else pltpu.bitcast(raw, jnp.uint32)
    # uint32 -> uniform [0,1): 23 random mantissa bits into [1,2), then -1.
    fbits = (bits >> 9) | jnp.uint32(0x3F800000)
    u = pltpu.bitcast(fbits, jnp.float32) - 1.0
    e = -jnp.log(jnp.maximum(u, 1e-12))               # lower guard only

    denom = _adj_denominator(li_ref[...], lj_ref[...], e)
    a_ref[...] = pl.reciprocal(denom, approx=True).astype(a_ref.dtype)


def _adj_kernel_hostnoise(li_ref, lj_ref, e_ref, a_ref):
    """Fallback path (non-TPU backend / interpret): Exp(1) noise passed in."""
    e = jnp.maximum(e_ref[...], 1e-12)
    denom = _adj_denominator(li_ref[...], lj_ref[...], e)
    a_ref[...] = (1.0 / denom).astype(a_ref.dtype)


def generator_forward(R, T, s, params, seed=0):
    """Pallas forward of Generator: returns (x, A).  `s` is unused (as in torch)."""
    del s
    N, d_r = R.shape
    d_t = T.shape[1]
    wx, bx = params["wx"], params["bx"]
    wa, ba = params["wa"], params["ba"]
    feature_dim = wx.shape[1]
    h_dim2 = wa.shape[1]

    # Fused weight [Wx | Wa] (in, out) split along the input dim into the
    # R-facing and T-facing halves (z @ W == R @ W_r + T @ W_t).
    W = jnp.concatenate([wx, wa], axis=1).astype(jnp.float32)
    W_r, W_t = W[:d_r], W[d_r:]
    b = jnp.concatenate([bx, ba])[None, :].astype(jnp.float32)

    # Tile first, then cdiv -- no N padding, no post-kernel slice copy.
    tile = min(_TILE_CAP, _round_up(N, 128))
    nt = pl.cdiv(N, tile)

    # ---- stage 1: x and relu-logits ----------------------------------------
    x, logits = pl.pallas_call(
        _embed_kernel,
        grid=(nt,),
        in_specs=[
            pl.BlockSpec((tile, d_r), lambda i: (i, 0)),
            pl.BlockSpec((tile, d_t), lambda i: (i, 0)),
            pl.BlockSpec((d_r, feature_dim + h_dim2), lambda i: (0, 0)),
            pl.BlockSpec((d_t, feature_dim + h_dim2), lambda i: (0, 0)),
            pl.BlockSpec((1, feature_dim + h_dim2), lambda i: (0, 0)),
        ],
        out_specs=[
            pl.BlockSpec((tile, feature_dim), lambda i: (i, 0)),
            pl.BlockSpec((tile, h_dim2), lambda i: (i, 0)),
        ],
        out_shape=(
            jax.ShapeDtypeStruct((N, feature_dim), jnp.float32),
            jax.ShapeDtypeStruct((N, h_dim2), jnp.float32),
        ),
        compiler_params=pltpu.CompilerParams(dimension_semantics=("parallel",)),
        cost_estimate=pl.CostEstimate(
            flops=2 * N * (d_r + d_t) * (feature_dim + h_dim2),
            transcendentals=0,
            bytes_accessed=4 * (N * (d_r + d_t) + N * (feature_dim + h_dim2)
                                + (d_r + d_t + 1) * (feature_dim + h_dim2))),
    )(R.astype(jnp.float32), T.astype(jnp.float32), W_r, W_t, b)

    # ---- stage 2: gumbel-sigmoid adjacency ----------------------------------
    adj_cost = pl.CostEstimate(
        flops=2 * N * N * h_dim2 + 3 * N * N,
        transcendentals=3 * N * N,
        bytes_accessed=4 * N * N + 8 * N * h_dim2)
    sem2 = pltpu.CompilerParams(dimension_semantics=("parallel", "parallel"))

    if jax.default_backend() == "tpu":
        # In-kernel hardware PRNG (no (N,N) noise array read from HBM).
        seed_arr = jnp.asarray([seed], dtype=jnp.int32)
        A = pl.pallas_call(
            _adj_kernel_tpu,
            grid_spec=pltpu.PrefetchScalarGridSpec(
                num_scalar_prefetch=1,
                grid=(nt, nt),
                in_specs=[
                    pl.BlockSpec((tile, h_dim2), lambda i, j, seed_ref: (i, 0)),
                    pl.BlockSpec((tile, h_dim2), lambda i, j, seed_ref: (j, 0)),
                ],
                out_specs=pl.BlockSpec((tile, tile), lambda i, j, seed_ref: (i, j)),
            ),
            out_shape=jax.ShapeDtypeStruct((N, N), jnp.float32),
            compiler_params=sem2,
            cost_estimate=adj_cost,
        )(seed_arr, logits, logits)
    else:
        # Non-TPU backend (e.g. CPU interpret): the TPU PRNG primitives have no
        # lowering there, so draw e = -log(u) ~ Exp(1) with jax.random and feed
        # it as a tiled input.
        e = jax.random.exponential(jax.random.PRNGKey(seed), (N, N), jnp.float32)
        A = pl.pallas_call(
            _adj_kernel_hostnoise,
            grid=(nt, nt),
            in_specs=[
                pl.BlockSpec((tile, h_dim2), lambda i, j: (i, 0)),
                pl.BlockSpec((tile, h_dim2), lambda i, j: (j, 0)),
                pl.BlockSpec((tile, tile), lambda i, j: (i, j)),
            ],
            out_specs=pl.BlockSpec((tile, tile), lambda i, j: (i, j)),
            out_shape=jax.ShapeDtypeStruct((N, N), jnp.float32),
            compiler_params=sem2,
            cost_estimate=adj_cost,
        )(logits, logits, e)

    return x, A


def init_params(key, feature_dim, h_dim, h_dim2=16):
    """PyTorch-style uniform(+-1/sqrt(fan_in)) init; weights stored (in, out)."""
    k1, k2, k3, k4 = jax.random.split(key, 4)
    bound = 1.0 / jnp.sqrt(jnp.float32(h_dim))
    return {
        "wx": jax.random.uniform(k1, (h_dim, feature_dim), jnp.float32, -bound, bound),
        "bx": jax.random.uniform(k2, (feature_dim,), jnp.float32, -bound, bound),
        "wa": jax.random.uniform(k3, (h_dim, h_dim2), jnp.float32, -bound, bound),
        "ba": jax.random.uniform(k4, (h_dim2,), jnp.float32, -bound, bound),
    }


if __name__ == "__main__":
    # Shapes implied by the forward: N rows of node embeddings.
    N = 300          # not a multiple of 128 -> exercises masked edge tiles
    dR, dT = 16, 16  # h_dim = 32 after the (implicit) concat
    feature_dim, h_dim2 = 4, 16

    key = jax.random.PRNGKey(0)
    k_r, k_t, k_p = jax.random.split(key, 3)
    R = jax.random.normal(k_r, (N, dR), jnp.float32)
    T = jax.random.normal(k_t, (N, dT), jnp.float32)
    s = jnp.zeros((N,), jnp.float32)   # unused by forward, kept for signature parity
    params = init_params(k_p, feature_dim, dR + dT, h_dim2)

    x, A = generator_forward(R, T, s, params, seed=0)
    jax.block_until_ready((x, A))

    # Reference checks. x is deterministic; A's noise stream depends on the
    # backend path (hardware PRNG vs jax.random), so A is only bit-checked on
    # the fallback path and envelope-checked otherwise.
    z = jnp.concatenate([R, T], axis=-1)
    x_ref = z @ params["wx"] + params["bx"]
    logits_ref = jnp.maximum(z @ params["wa"] + params["ba"], 0.0)
    adj_ref = logits_ref @ logits_ref.T

    assert x.shape == (N, feature_dim) and A.shape == (N, N)
    assert bool(jnp.allclose(x, x_ref, atol=1e-4, rtol=1e-4))
    assert bool(jnp.all(jnp.isfinite(x))) and bool(jnp.all(jnp.isfinite(A)))
    assert bool(jnp.all((A >= 0.0) & (A <= 1.0)))

    if jax.default_backend() != "tpu":
        e_ref = jnp.maximum(
            jax.random.exponential(jax.random.PRNGKey(0), (N, N), jnp.float32), 1e-12)
        A_ref = 1.0 / (1.0 + e_ref * jnp.exp(-adj_ref))   # == sigmoid(-log(e)+adj)
        assert bool(jnp.allclose(A, A_ref, atol=1e-4, rtol=1e-4))

    print("KERNEL_OK")
</pallas_src>

<mosaic_0001>
module attributes {stable_mosaic.version = 11 : i64} {
  func.func @_embed_kernel(%arg0: i32, %arg1: memref<384x16xf32, #tpu.memory_space<vmem>>, %arg2: memref<384x16xf32, #tpu.memory_space<vmem>>, %arg3: memref<16x20xf32, #tpu.memory_space<vmem>>, %arg4: memref<16x20xf32, #tpu.memory_space<vmem>>, %arg5: memref<1x20xf32, #tpu.memory_space<vmem>>, %arg6: memref<384x4xf32, #tpu.memory_space<vmem>>, %arg7: memref<384x16xf32, #tpu.memory_space<vmem>>) attributes {dimension_semantics = [#tpu.dimension_semantics<parallel>], iteration_bounds = array<i64: 1>, scalar_prefetch = 0 : i64, scratch_operands = 0 : i64, tpu.core_type = #tpu.core_type<tc>, window_params = [{transform_indices = @transform_0, window_bounds = array<i64: 384, 16>}, {transform_indices = @transform_1, window_bounds = array<i64: 384, 16>}, {pipeline_mode = #tpu.pipeline_mode<synchronous>, transform_indices = @transform_2, window_bounds = array<i64: 16, 20>}, {pipeline_mode = #tpu.pipeline_mode<synchronous>, transform_indices = @transform_3, window_bounds = array<i64: 16, 20>}, {pipeline_mode = #tpu.pipeline_mode<synchronous>, transform_indices = @transform_4, window_bounds = array<i64: 1, 20>}, {transform_indices = @transform_5, window_bounds = array<i64: 384, 4>}, {transform_indices = @transform_6, window_bounds = array<i64: 384, 16>}]} {
    %c0 = arith.constant 0 : index
    %c0_0 = arith.constant 0 : index
    %0 = vector.load %arg1[%c0, %c0_0] : memref<384x16xf32, #tpu.memory_space<vmem>>, vector<384x16xf32>
    %c0_1 = arith.constant 0 : index
    %c0_2 = arith.constant 0 : index
    %1 = vector.load %arg3[%c0_1, %c0_2] : memref<16x20xf32, #tpu.memory_space<vmem>>, vector<16x20xf32>
    %cst = arith.constant dense<0.000000e+00> : vector<384x20xf32>
    %2 = tpu.matmul %0, %1, %cst {dimension_numbers = #tpu.dot_dimension_numbers<[1], [0], [0], [1], [0, 0, 1, 1], [], []>} : vector<384x16xf32>, vector<16x20xf32>, vector<384x20xf32> -> vector<384x20xf32>
    %c0_3 = arith.constant 0 : index
    %c0_4 = arith.constant 0 : index
    %3 = vector.load %arg2[%c0_3, %c0_4] : memref<384x16xf32, #tpu.memory_space<vmem>>, vector<384x16xf32>
    %c0_5 = arith.constant 0 : index
    %c0_6 = arith.constant 0 : index
    %4 = vector.load %arg4[%c0_5, %c0_6] : memref<16x20xf32, #tpu.memory_space<vmem>>, vector<16x20xf32>
    %cst_7 = arith.constant dense<0.000000e+00> : vector<384x20xf32>
    %5 = tpu.matmul %3, %4, %cst_7 {dimension_numbers = #tpu.dot_dimension_numbers<[1], [0], [0], [1], [0, 0, 1, 1], [], []>} : vector<384x16xf32>, vector<16x20xf32>, vector<384x20xf32> -> vector<384x20xf32>
    %6 = arith.addf %2, %5 : vector<384x20xf32>
    %c0_8 = arith.constant 0 : index
    %c0_9 = arith.constant 0 : index
    %7 = vector.load %arg5[%c0_8, %c0_9] : memref<1x20xf32, #tpu.memory_space<vmem>>, vector<1x20xf32>
    %8 = vector.broadcast %7 : vector<1x20xf32> to vector<384x20xf32>
    %9 = arith.addf %6, %8 : vector<384x20xf32>
    %10 = vector.extract_strided_slice %9 {offsets = [0, 0], sizes = [384, 4], strides = [1, 1]} : vector<384x20xf32> to vector<384x4xf32>
    %c0_10 = arith.constant 0 : index
    %c0_11 = arith.constant 0 : index
    %11 = vector.load %arg6[%c0_10, %c0_11] : memref<384x4xf32, #tpu.memory_space<vmem>>, vector<384x4xf32>
    tpu.vector_store %arg6[%c0_10, %c0_11], %10 {strides = array<i32>} : memref<384x4xf32, #tpu.memory_space<vmem>>, vector<384x4xf32>,
    %12 = vector.extract_strided_slice %9 {offsets = [0, 4], sizes = [384, 16], strides = [1, 1]} : vector<384x20xf32> to vector<384x16xf32>
    %cst_12 = arith.constant 0.000000e+00 : f32
    %13 = vector.broadcast %cst_12 : f32 to vector<384x16xf32>
    %14 = arith.maximumf %12, %13 : vector<384x16xf32>
    %c0_13 = arith.constant 0 : index
    %c0_14 = arith.constant 0 : index
    %15 = vector.load %arg7[%c0_13, %c0_14] : memref<384x16xf32, #tpu.memory_space<vmem>>, vector<384x16xf32>
    tpu.vector_store %arg7[%c0_13, %c0_14], %14 {strides = array<i32>} : memref<384x16xf32, #tpu.memory_space<vmem>>, vector<384x16xf32>,
    return
  }
  func.func @transform_0(%arg0: i32) -> (i32, i32) {
    %c0_i32 = arith.constant 0 : i32
    %c0_i32_0 = arith.constant 0 : i32
    return %arg0, %c0_i32 : i32, i32
  }
  func.func @transform_1(%arg0: i32) -> (i32, i32) {
    %c0_i32 = arith.constant 0 : i32
    %c0_i32_0 = arith.constant 0 : i32
    return %arg0, %c0_i32 : i32, i32
  }
  func.func @transform_2(%arg0: i32) -> (i32, i32) {
    %c0_i32 = arith.constant 0 : i32
    %c0_i32_0 = arith.constant 0 : i32
    %c0_i32_1 = arith.constant 0 : i32
    return %c0_i32, %c0_i32_0 : i32, i32
  }
  func.func @transform_3(%arg0: i32) -> (i32, i32) {
    %c0_i32 = arith.constant 0 : i32
    %c0_i32_0 = arith.constant 0 : i32
    %c0_i32_1 = arith.constant 0 : i32
    return %c0_i32, %c0_i32_0 : i32, i32
  }
  func.func @transform_4(%arg0: i32) -> (i32, i32) {
    %c0_i32 = arith.constant 0 : i32
    %c0_i32_0 = arith.constant 0 : i32
    %c0_i32_1 = arith.constant 0 : i32
    return %c0_i32, %c0_i32_0 : i32, i32
  }
  func.func @transform_5(%arg0: i32) -> (i32, i32) {
    %c0_i32 = arith.constant 0 : i32
    %c0_i32_0 = arith.constant 0 : i32
    return %arg0, %c0_i32 : i32, i32
  }
  func.func @transform_6(%arg0: i32) -> (i32, i32) {
    %c0_i32 = arith.constant 0 : i32
    %c0_i32_0 = arith.constant 0 : i32
    return %arg0, %c0_i32 : i32, i32
  }
}

</mosaic_0001>

<bundles_post_ra>
// kernel: tpu_custom_call.1
= control target key start
LH: loop header
LB: loop body
LE: loop exit
PB: predicated region body
PF: predicated region fallthrough
CT: control target
= control target key end

     0   :  { %vm122_vm0 = vcmask 130048   ;;  %vm1076_vm1 = vcmask 31744   ;;  %s2978_s0 = inlined_call_operand.vmem [shape: f32[300,16], index: 0, kind: input, shape index: {}]   ;;  %s2979_s1 = inlined_call_operand.vmem [shape: f32[300,16], index: 1, kind: input, shape index: {}]   ;;  %s2980_s2 = inlined_call_operand.vmem [shape: f32[16,20], index: 2, kind: input, shape index: {}]   ;;  %s2981_s3 = inlined_call_operand.vmem [shape: f32[16,20], index: 3, kind: input, shape index: {}]   ;;  %s2982_s4 = inlined_call_operand.vmem [shape: f32[1,20], index: 4, kind: input, shape index: {}]   ;;  %s2983_s5 = inlined_call_operand.vmem [shape: f32[300,4], index: 5, kind: output, shape index: {0}]   ;;  %s2984_s6 = inlined_call_operand.vmem [shape: f32[300,16], index: 6, kind: output, shape index: {1}]  }
   0x1   :  { %v121_v0 = vld [vmem:[%s2981_s3 + $0x8] sm:$0xff]  ;;  %v120_v2 = vld [vmem:[%s2981_s3] sm:$0xff]  ;;  %v74_v8 = vld [vmem:[%s2979_s1 + $0x10] sm:$0xff] }
   0x2   :  { %v71_v1 = vld [vmem:[%s2980_s2 + $0x8] sm:$0xff]  ;;  %1988 = vmatprep.subr.mxu0 %v121_v0  ;;  %v70_v3 = vld [vmem:[%s2980_s2] sm:$0xff]  ;;  %v24_v9 = vld [vmem:[%s2978_s0 + $0x10] sm:$0xff] }
   0x3   :  { %2064 = vmatprep.subr.mxu1 %v71_v1  ;;  %v72_v4 = vld [vmem:[%s2979_s1] sm:$0xff]  ;;  %1989 = vmatpush3.msra.mxu0 %v121_v0  ;;  %v73_v6 = vld [vmem:[%s2979_s1 + $0x8] sm:$0xff]  ;;  %v75_v10 = vld [vmem:[%s2979_s1 + $0x18] sm:$0xff] }
   0x4   :  { %2065 = vmatpush3.msra.mxu1 %v71_v1  ;;  %v22_v5 = vld [vmem:[%s2978_s0] sm:$0xff]  ;;  %1990 = vmatprep.subr.mxu0 %v120_v2  ;;  %v23_v7 = vld [vmem:[%s2978_s0 + $0x8] sm:$0xff]  ;;  %v25_v11 = vld [vmem:[%s2978_s0 + $0x18] sm:$0xff] }
   0x5   :  { %2066 = vmatprep.subr.mxu1 %v70_v3  ;;  %1991 = vmatpush3.msra.mxu0 %v120_v2  ;;  %v76_v12 = vld [vmem:[%s2979_s1 + $0x20] sm:$0xff]  ;;  %v77_v14 = vld [vmem:[%s2979_s1 + $0x28] sm:$0xff]  ;;  %v78_v16 = vld [vmem:[%s2979_s1 + $0x30] sm:$0xff] }
   0x6   :  { %1992 = vmatprep.mubr.msk.f32.mxu0 %vm122_vm0, %v72_v4  ;;  %2067 = vmatpush3.msra.mxu1 %v70_v3  ;;  %v26_v13 = vld [vmem:[%s2978_s0 + $0x20] sm:$0xff]  ;;  %v27_v15 = vld [vmem:[%s2978_s0 + $0x28] sm:$0xff]  ;;  %v28_v17 = vld [vmem:[%s2978_s0 + $0x30] sm:$0xff] }
   0x7   :  { %2068 = vmatprep.mubr.msk.f32.mxu1 %vm122_vm0, %v22_v5  ;;  %1993 = vmatmul.mubr.msk.f32.vlgmr.msra.gmra.mxu0 %vm122_vm0, %v73_v6  ;;  %v79_v18 = vld [vmem:[%s2979_s1 + $0x38] sm:$0xff]  ;;  %v80_v20 = vld [vmem:[%s2979_s1 + $0x40] sm:$0xff]  ;;  %v81_v22 = vld [vmem:[%s2979_s1 + $0x48] sm:$0xff] }
   0x8   :  { %2069 = vmatmul.mubr.msk.f32.vlgmr.msra.gmra.mxu1 %vm122_vm0, %v23_v7  ;;  %1995 = vmatprep.mubr.msk.f32.mxu0 %vm122_vm0, %v74_v8  ;;  %v29_v19 = vld [vmem:[%s2978_s0 + $0x38] sm:$0xff]  ;;  %v30_v21 = vld [vmem:[%s2978_s0 + $0x40] sm:$0xff]  ;;  %v31_v23 = vld [vmem:[%s2978_s0 + $0x48] sm:$0xff] }
   0x9   :  { %2071 = vmatprep.mubr.msk.f32.mxu1 %vm122_vm0, %v24_v9  ;;  %v82_v24 = vld [vmem:[%s2979_s1 + $0x50] sm:$0xff]  ;;  %v83_v26 = vld [vmem:[%s2979_s1 + $0x58] sm:$0xff]  ;;  %v84_v28 = vld [vmem:[%s2979_s1 + $0x60] sm:$0xff] }
   0xa   :  { %v32_v25 = vld [vmem:[%s2978_s0 + $0x50] sm:$0xff]  ;;  %v33_v27 = vld [vmem:[%s2978_s0 + $0x58] sm:$0xff]  ;;  %v34_v29 = vld [vmem:[%s2978_s0 + $0x60] sm:$0xff] }
   0xb   :  { %1996 = vmatmul.mubr.msk.f32.gmra.mxu0 %vm122_vm0, %v75_v10  ;;  %v85_v30 = vld [vmem:[%s2979_s1 + $0x68] sm:$0xff]  ;;  %v86_v32 = vld [vmem:[%s2979_s1 + $0x70] sm:$0xff]  ;;  %v87_v34 = vld [vmem:[%s2979_s1 + $0x78] sm:$0xff] }
   0xc   :  { %2072 = vmatmul.mubr.msk.f32.gmra.mxu1 %vm122_vm0, %v25_v11  ;;  %1998 = vmatprep.mubr.msk.f32.mxu0 %vm122_vm0, %v76_v12  ;;  %v35_v31 = vld [vmem:[%s2978_s0 + $0x68] sm:$0xff]  ;;  %v36_v33 = vld [vmem:[%s2978_s0 + $0x70] sm:$0xff]  ;;  %v37_v35 = vld [vmem:[%s2978_s0 + $0x78] sm:$0xff] }
   0xd   :  { %2074 = vmatprep.mubr.msk.f32.mxu1 %vm122_vm0, %v26_v13  ;;  %v88_v36 = vld [vmem:[%s2979_s1 + $0x80] sm:$0xff]  ;;  %v89_v38 = vld [vmem:[%s2979_s1 + $0x88] sm:$0xff]  ;;  %v90_v40 = vld [vmem:[%s2979_s1 + $0x90] sm:$0xff] }
   0xe   :  { %v38_v37 = vld [vmem:[%s2978_s0 + $0x80] sm:$0xff]  ;;  %v39_v39 = vld [vmem:[%s2978_s0 + $0x88] sm:$0xff]  ;;  %v40_v41 = vld [vmem:[%s2978_s0 + $0x90] sm:$0xff] }
   0xf   :  { %1999 = vmatmul.mubr.msk.f32.gmra.mxu0 %vm122_vm0, %v77_v14  ;;  %v91_v42 = vld [vmem:[%s2979_s1 + $0x98] sm:$0xff]  ;;  %v92_v44 = vld [vmem:[%s2979_s1 + $0xa0] sm:$0xff]  ;;  %v93_v46 = vld [vmem:[%s2979_s1 + $0xa8] sm:$0xff] }
  0x10   :  { %2075 = vmatmul.mubr.msk.f32.gmra.mxu1 %vm122_vm0, %v27_v15  ;;  %2001 = vmatprep.mubr.msk.f32.mxu0 %vm122_vm0, %v78_v16  ;;  %v41_v43 = vld [vmem:[%s2978_s0 + $0x98] sm:$0xff]  ;;  %v42_v45 = vld [vmem:[%s2978_s0 + $0xa0] sm:$0xff]  ;;  %v43_v47 = vld [vmem:[%s2978_s0 + $0xa8] sm:$0xff] }
  0x11   :  { %2077 = vmatprep.mubr.msk.f32.mxu1 %vm122_vm0, %v28_v17  ;;  %v94_v48 = vld [vmem:[%s2979_s1 + $0xb0] sm:$0xff]  ;;  %v95_v50 = vld [vmem:[%s2979_s1 + $0xb8] sm:$0xff]  ;;  %v96_v52 = vld [vmem:[%s2979_s1 + $0xc0] sm:$0xff] }
  0x12   :  { %v44_v49 = vld [vmem:[%s2978_s0 + $0xb0] sm:$0xff]  ;;  %v45_v51 = vld [vmem:[%s2978_s0 + $0xb8] sm:$0xff]  ;;  %v46_v53 = vld [vmem:[%s2978_s0 + $0xc0] sm:$0xff] }
  0x13   :  { %2002 = vmatmul.mubr.msk.f32.gmra.mxu0 %vm122_vm0, %v79_v18  ;;  %v97_v54 = vld [vmem:[%s2979_s1 + $0xc8] sm:$0xff]  ;;  %v98_v56 = vld [vmem:[%s2979_s1 + $0xd0] sm:$0xff]  ;;  %v99_v58 = vld [vmem:[%s2979_s1 + $0xd8] sm:$0xff] }
  0x14   :  { %2078 = vmatmul.mubr.msk.f32.gmra.mxu1 %vm122_vm0, %v29_v19  ;;  %2004 = vmatprep.mubr.msk.f32.mxu0 %vm122_vm0, %v80_v20  ;;  %v47_v55 = vld [vmem:[%s2978_s0 + $0xc8] sm:$0xff]  ;;  %v48_v57 = vld [vmem:[%s2978_s0 + $0xd0] sm:$0xff]  ;;  %v49_v59 = vld [vmem:[%s2978_s0 + $0xd8] sm:$0xff] }
  0x15   :  { %2080 = vmatprep.mubr.msk.f32.mxu1 %vm122_vm0, %v30_v21  ;;  %v100_v60 = vld [vmem:[%s2979_s1 + $0xe0] sm:$0xff]  ;;  %v101_v62 = vld [vmem:[%s2979_s1 + $0xe8] sm:$0xff]  ;;  %v102_v0 = vld [vmem:[%s2979_s1 + $0xf0] sm:$0xff] }
  0x16   :  { %v50_v61 = vld [vmem:[%s2978_s0 + $0xe0] sm:$0xff]  ;;  %v51_v63 = vld [vmem:[%s2978_s0 + $0xe8] sm:$0xff]  ;;  %v52_v1 = vld [vmem:[%s2978_s0 + $0xf0] sm:$0xff] }
  0x17   :  { %2005 = vmatmul.mubr.msk.f32.gmra.mxu0 %vm122_vm0, %v81_v22  ;;  %v103_v2 = vld [vmem:[%s2979_s1 + $0xf8] sm:$0xff]  ;;  %v104_v4 = vld [vmem:[%s2979_s1 + $0x100] sm:$0xff]  ;;  %v105_v6 = vld [vmem:[%s2979_s1 + $0x108] sm:$0xff] }
  0x18   :  { %2081 = vmatmul.mubr.msk.f32.gmra.mxu1 %vm122_vm0, %v31_v23  ;;  %2007 = vmatprep.mubr.msk.f32.mxu0 %vm122_vm0, %v82_v24  ;;  %v53_v3 = vld [vmem:[%s2978_s0 + $0xf8] sm:$0xff]  ;;  %v54_v5 = vld [vmem:[%s2978_s0 + $0x100] sm:$0xff]  ;;  %v55_v7 = vld [vmem:[%s2978_s0 + $0x108] sm:$0xff] }
  0x19   :  { %2083 = vmatprep.mubr.msk.f32.mxu1 %vm122_vm0, %v32_v25  ;;  %v106_v8 = vld [vmem:[%s2979_s1 + $0x110] sm:$0xff]  ;;  %v107_v10 = vld [vmem:[%s2979_s1 + $0x118] sm:$0xff]  ;;  %v108_v12 = vld [vmem:[%s2979_s1 + $0x120] sm:$0xff] }
  0x1a   :  { %v56_v9 = vld [vmem:[%s2978_s0 + $0x110] sm:$0xff]  ;;  %v57_v11 = vld [vmem:[%s2978_s0 + $0x118] sm:$0xff]  ;;  %v58_v13 = vld [vmem:[%s2978_s0 + $0x120] sm:$0xff] }
  0x1b   :  { %2008 = vmatmul.mubr.msk.f32.gmra.mxu0 %vm122_vm0, %v83_v26  ;;  %v109_v14 = vld [vmem:[%s2979_s1 + $0x128] sm:$0xff]  ;;  %v110_v16 = vld [vmem:[%s2979_s1 + $0x130] sm:$0xff]  ;;  %v111_v18 = vld [vmem:[%s2979_s1 + $0x138] sm:$0xff] }
  0x1c   :  { %2084 = vmatmul.mubr.msk.f32.gmra.mxu1 %vm122_vm0, %v33_v27  ;;  %2010 = vmatprep.mubr.msk.f32.mxu0 %vm122_vm0, %v84_v28  ;;  %v59_v15 = vld [vmem:[%s2978_s0 + $0x128] sm:$0xff]  ;;  %v60_v17 = vld [vmem:[%s2978_s0 + $0x130] sm:$0xff]  ;;  %v61_v19 = vld [vmem:[%s2978_s0 + $0x138] sm:$0xff] }
  0x1d   :  { %2086 = vmatprep.mubr.msk.f32.mxu1 %vm122_vm0, %v34_v29  ;;  %v112_v20 = vld [vmem:[%s2979_s1 + $0x140] sm:$0xff]  ;;  %v113_v22 = vld [vmem:[%s2979_s1 + $0x148] sm:$0xff]  ;;  %v114_v24 = vld [vmem:[%s2979_s1 + $0x150] sm:$0xff] }
  0x1e   :  { %v62_v21 = vld [vmem:[%s2978_s0 + $0x140] sm:$0xff]  ;;  %v63_v23 = vld [vmem:[%s2978_s0 + $0x148] sm:$0xff]  ;;  %v64_v25 = vld [vmem:[%s2978_s0 + $0x150] sm:$0xff] }
  0x1f   :  { %2011 = vmatmul.mubr.msk.f32.gmra.mxu0 %vm122_vm0, %v85_v30  ;;  %v115_v26 = vld [vmem:[%s2979_s1 + $0x158] sm:$0xff]  ;;  %v116_v28 = vld [vmem:[%s2979_s1 + $0x160] sm:$0xff]  ;;  %v117_v30 = vld [vmem:[%s2979_s1 + $0x168] sm:$0xff] }
  0x20   :  { %2087 = vmatmul.mubr.msk.f32.gmra.mxu1 %vm122_vm0, %v35_v31  ;;  %2013 = vmatprep.mubr.msk.f32.mxu0 %vm122_vm0, %v86_v32  ;;  %v65_v27 = vld [vmem:[%s2978_s0 + $0x158] sm:$0xff]  ;;  %v66_v29 = vld [vmem:[%s2978_s0 + $0x160] sm:$0xff]  ;;  %v67_v31 = vld [vmem:[%s2978_s0 + $0x168] sm:$0xff] }
  0x21   :  { %2089 = vmatprep.mubr.msk.f32.mxu1 %vm122_vm0, %v36_v33  ;;  %v118_v32 = vld [vmem:[%s2979_s1 + $0x170] sm:$0xff] }
  0x22   :  { %v68_v33 = vld [vmem:[%s2978_s0 + $0x170] sm:$0xff] }
  0x23   :  { %2014 = vmatmul.mubr.msk.f32.gmra.mxu0 %vm122_vm0, %v87_v34  ;;  %v119_v34 = vld [vmem:[%s2979_s1 + $0x178] sm:$0xff] }
  0x24   :  { %2090 = vmatmul.mubr.msk.f32.gmra.mxu1 %vm122_vm0, %v37_v35  ;;  %2016 = vmatprep.mubr.msk.f32.mxu0 %vm122_vm0, %v88_v36  ;;  %v69_v35 = vld [vmem:[%s2978_s0 + $0x178] sm:$0xff]  ;;  %s2141_s0 = smov 124  }
  0x25   :  { %2092 = vmatprep.mubr.msk.f32.mxu1 %vm122_vm0, %v38_v37 }
  0x27   :  { %2017 = vmatmul.mubr.msk.f32.gmra.mxu0 %vm122_vm0, %v89_v38  ;;  %v2576_v38 = vld [vmem:[%s2982_s4] ss:$0 sm:$0xff] }
  0x28   :  { %2093 = vmatmul.mubr.msk.f32.gmra.mxu1 %vm122_vm0, %v39_v39  ;;  %2019 = vmatprep.mubr.msk.f32.mxu0 %vm122_vm0, %v90_v40 }
  0x29   :  { %2095 = vmatprep.mubr.msk.f32.mxu1 %vm122_vm0, %v40_v41 }
  0x2b   :  { %2020 = vmatmul.mubr.msk.f32.gmra.mxu0 %vm122_vm0, %v91_v42 }
  0x2c   :  { %2096 = vmatmul.mubr.msk.f32.gmra.mxu1 %vm122_vm0, %v41_v43  ;;  %2022 = vmatprep.mubr.msk.f32.mxu0 %vm122_vm0, %v92_v44 }
  0x2d   :  { %2098 = vmatprep.mubr.msk.f32.mxu1 %vm122_vm0, %v42_v45 }
  0x2f   :  { %2023 = vmatmul.mubr.msk.f32.gmra.mxu0 %vm122_vm0, %v93_v46 }
  0x30   :  { %2099 = vmatmul.mubr.msk.f32.gmra.mxu1 %vm122_vm0, %v43_v47  ;;  %2025 = vmatprep.mubr.msk.f32.mxu0 %vm122_vm0, %v94_v48 }
  0x31   :  { %2101 = vmatprep.mubr.msk.f32.mxu1 %vm122_vm0, %v44_v49 }
  0x33   :  { %2026 = vmatmul.mubr.msk.f32.gmra.mxu0 %vm122_vm0, %v95_v50 }
  0x34   :  { %2102 = vmatmul.mubr.msk.f32.gmra.mxu1 %vm122_vm0, %v45_v51  ;;  %2028 = vmatprep.mubr.msk.f32.mxu0 %vm122_vm0, %v96_v52 }
  0x35   :  { %2104 = vmatprep.mubr.msk.f32.mxu1 %vm122_vm0, %v46_v53 }
  0x37   :  { %2029 = vmatmul.mubr.msk.f32.gmra.mxu0 %vm122_vm0, %v97_v54 }
  0x38   :  { %2105 = vmatmul.mubr.msk.f32.gmra.mxu1 %vm122_vm0, %v47_v55  ;;  %2031 = vmatprep.mubr.msk.f32.mxu0 %vm122_vm0, %v98_v56 }
  0x39   :  { %2107 = vmatprep.mubr.msk.f32.mxu1 %vm122_vm0, %v48_v57 }
  0x3b   :  { %2032 = vmatmul.mubr.msk.f32.gmra.mxu0 %vm122_vm0, %v99_v58 }
  0x3c   :  { %2108 = vmatmul.mubr.msk.f32.gmra.mxu1 %vm122_vm0, %v49_v59  ;;  %2034 = vmatprep.mubr.msk.f32.mxu0 %vm122_vm0, %v100_v60 }
  0x3d   :  { %2110 = vmatprep.mubr.msk.f32.mxu1 %vm122_vm0, %v50_v61 }
  0x3f   :  { %2035 = vmatmul.mubr.msk.f32.gmra.mxu0 %vm122_vm0, %v101_v62 }
  0x40   :  { %2111 = vmatmul.mubr.msk.f32.gmra.mxu1 %vm122_vm0, %v51_v63  ;;  %2037 = vmatprep.mubr.msk.f32.mxu0 %vm122_vm0, %v102_v0 }
  0x41   :  { %2113 = vmatprep.mubr.msk.f32.mxu1 %vm122_vm0, %v52_v1 }
  0x43   :  { %2038 = vmatmul.mubr.msk.f32.gmra.mxu0 %vm122_vm0, %v103_v2 }
  0x44   :  { %2114 = vmatmul.mubr.msk.f32.gmra.mxu1 %vm122_vm0, %v53_v3  ;;  %2040 = vmatprep.mubr.msk.f32.mxu0 %vm122_vm0, %v104_v4 }
  0x45   :  { %2116 = vmatprep.mubr.msk.f32.mxu1 %vm122_vm0, %v54_v5 }
  0x47   :  { %2041 = vmatmul.mubr.msk.f32.gmra.mxu0 %vm122_vm0, %v105_v6 }
  0x48   :  { %2117 = vmatmul.mubr.msk.f32.gmra.mxu1 %vm122_vm0, %v55_v7  ;;  %2043 = vmatprep.mubr.msk.f32.mxu0 %vm122_vm0, %v106_v8 }
  0x49   :  { %2119 = vmatprep.mubr.msk.f32.mxu1 %vm122_vm0, %v56_v9 }
  0x4b   :  { %2044 = vmatmul.mubr.msk.f32.gmra.mxu0 %vm122_vm0, %v107_v10 }
  0x4c   :  { %2120 = vmatmul.mubr.msk.f32.gmra.mxu1 %vm122_vm0, %v57_v11  ;;  %2046 = vmatprep.mubr.msk.f32.mxu0 %vm122_vm0, %v108_v12 }
  0x4d   :  { %2122 = vmatprep.mubr.msk.f32.mxu1 %vm122_vm0, %v58_v13 }
  0x4f   :  { %2047 = vmatmul.mubr.msk.f32.gmra.mxu0 %vm122_vm0, %v109_v14 }
  0x50   :  { %2123 = vmatmul.mubr.msk.f32.gmra.mxu1 %vm122_vm0, %v59_v15  ;;  %2049 = vmatprep.mubr.msk.f32.mxu0 %vm122_vm0, %v110_v16 }
  0x51   :  { %2125 = vmatprep.mubr.msk.f32.mxu1 %vm122_vm0, %v60_v17 }
  0x53   :  { %2050 = vmatmul.mubr.msk.f32.gmra.mxu0 %vm122_vm0, %v111_v18 }
  0x54   :  { %2126 = vmatmul.mubr.msk.f32.gmra.mxu1 %vm122_vm0, %v61_v19  ;;  %2052 = vmatprep.mubr.msk.f32.mxu0 %vm122_vm0, %v112_v20 }
  0x55   :  { %2128 = vmatprep.mubr.msk.f32.mxu1 %vm122_vm0, %v62_v21 }
  0x57   :  { %2053 = vmatmul.mubr.msk.f32.gmra.mxu0 %vm122_vm0, %v113_v22 }
  0x58   :  { %2129 = vmatmul.mubr.msk.f32.gmra.mxu1 %vm122_vm0, %v63_v23  ;;  %2055 = vmatprep.mubr.msk.f32.mxu0 %vm122_vm0, %v114_v24 }
  0x59   :  { %2131 = vmatprep.mubr.msk.f32.mxu1 %vm122_vm0, %v64_v25 }
  0x5b   :  { %2056 = vmatmul.mubr.msk.f32.gmra.mxu0 %vm122_vm0, %v115_v26 }
  0x5c   :  { %2132 = vmatmul.mubr.msk.f32.gmra.mxu1 %vm122_vm0, %v65_v27  ;;  %2058 = vmatprep.mubr.msk.f32.mxu0 %vm122_vm0, %v116_v28 }
  0x5d   :  { %2134 = vmatprep.mubr.msk.f32.mxu1 %vm122_vm0, %v66_v29 }
  0x5f   :  { %2059 = vmatmul.mubr.msk.f32.gmra.mxu0 %vm122_vm0, %v117_v30 }
  0x60   :  { %2135 = vmatmul.mubr.msk.f32.gmra.mxu1 %vm122_vm0, %v67_v31  ;;  %2061 = vmatprep.mubr.msk.f32.mxu0 %vm122_vm0, %v118_v32 }
  0x61   :  { %2137 = vmatprep.mubr.msk.f32.mxu1 %vm122_vm0, %v68_v33 }
  0x63   :  { %2062 = vmatmul.mubr.msk.f32.gmra.mxu0 %vm122_vm0, %v119_v34 }
  0x64   :  { %2138 = vmatmul.mubr.msk.f32.gmra.mxu1 %vm122_vm0, %v69_v35 }
  0xc7   :  { %v1994_v36 = vpop.f32.mrf.mxu0 }
  0xc8   :  { %v2070_v37 = vpop.f32.mrf.mxu1 }
  0xc9   :  { %v788_v39 = vadd.f32 %v2070_v37, %v1994_v36  ;;  %v333_v40 = vpop.f32.mrf.mxu0 }
  0xca   :  { %v782_v41 = vpop.f32.mrf.mxu1 }
  0xcb   :  { %v1029_v42 = vadd.f32 %v2576_v38, %v788_v39  ;;  %v783_v43 = vadd.f32 %v782_v41, %v333_v40  ;;  %v1997_v44 = vpop.f32.mrf.mxu0 }
  0xcc   :  { %v2073_v45 = vpop.f32.mrf.mxu1 }
  0xcd   :  { %1078 = vst.msk [vmem:[#allocation2 + $0x8] sm:$0xff] %vm1076_vm1, %v1029_v42  ;;  %v1028_v46 = vadd.f32 %v2576_v38, %v783_v43  ;;  %v798_v47 = vadd.f32 %v2073_v45, %v1997_v44  ;;  %v1126_v48 = vmax.f32 %v1029_v42, 0.0  ;;  %v343_v49 = vpop.f32.mrf.mxu0 }
  0xce   :  { %v792_v50 = vpop.f32.mrf.mxu1 }
  0xcf   :  { %1077 = vst.msk [vmem:[#allocation2] sm:$0xff] %vm1076_vm1, %v1028_v46  ;;  %v1031_v51 = vadd.f32 %v2576_v38, %v798_v47  ;;  %v793_v52 = vadd.f32 %v792_v50, %v343_v49  ;;  %1223 = vrot.lane.b32.xlu0 %v1126_v48, %s2141_s0  ;;  %v2000_v53 = vpop.f32.mrf.mxu0  ;;  %v1125_v58 = vmax.f32 %v1028_v46, 0.0 }
  0xd0   :  { %v2076_v54 = vpop.f32.mrf.mxu1 }
  0xd1   :  { %1080 = vst.msk [vmem:[#allocation2 + $0x18] sm:$0xff] %vm1076_vm1, %v1031_v51  ;;  %v1030_v55 = vadd.f32 %v2576_v38, %v793_v52  ;;  %v808_v56 = vadd.f32 %v2076_v54, %v2000_v53  ;;  %v1128_v57 = vmax.f32 %v1031_v51, 0.0  ;;  %v353_v59 = vpop.f32.mrf.mxu0 }
  0xd2   :  { %v802_v60 = vpop.f32.mrf.mxu1 }
  0xd3   :  { %1079 = vst.msk [vmem:[#allocation2 + $0x10] sm:$0xff] %vm1076_vm1, %v1030_v55  ;;  %v1033_v61 = vadd.f32 %v2576_v38, %v808_v56  ;;  %v803_v62 = vadd.f32 %v802_v60, %v353_v59  ;;  %1227 = vrot.lane.b32.xlu1 %v1128_v57, %s2141_s0  ;;  %1221 = vrot.lane.b32.xlu0 %v1125_v58, %s2141_s0  ;;  %v2003_v0 = vpop.f32.mrf.mxu0  ;;  %v1127_v4 = vmax.f32 %v1030_v55, 0.0 }
  0xd4   :  { %v1519_v63 = vld [vmem:[#allocation2 + $0x8] sm:$0xff]  ;;  %v2079_v1 = vpop.f32.mrf.mxu1 }
  0xd5   :  { %1520 = vst [vmem:[%s2983_s5 + $0x8] sm:$0xff] %v1519_v63  ;;  %1082 = vst.msk [vmem:[#allocation2 + $0x28] sm:$0xff] %vm1076_vm1, %v1033_v61  ;;  %v1032_v2 = vadd.f32 %v2576_v38, %v803_v62  ;;  %v818_v3 = vadd.f32 %v2079_v1, %v2003_v0  ;;  %v363_v6 = vpop.f32.mrf.mxu0  ;;  %v1130_v16 = vmax.f32 %v1033_v61, 0.0 }
  0xd6   :  { %v1517_v5 = vld [vmem:[#allocation2] sm:$0xff]  ;;  %v812_v7 = vpop.f32.mrf.mxu1 }
  0xd7   :  { %1518 = vst [vmem:[%s2983_s5] sm:$0xff] %v1517_v5  ;;  %1081 = vst.msk [vmem:[#allocation2 + $0x20] sm:$0xff] %vm1076_vm1, %v1032_v2  ;;  %v1035_v8 = vadd.f32 %v2576_v38, %v818_v3  ;;  %v813_v9 = vadd.f32 %v812_v7, %v363_v6  ;;  %1225 = vrot.lane.b32.xlu1 %v1127_v4, %s2141_s0  ;;  %v1129_v10 = vmax.f32 %v1032_v2, 0.0  ;;  %v2006_v12 = vpop.f32.mrf.mxu0 }
  0xd8   :  { %v1523_v11 = vld [vmem:[#allocation2 + $0x18] sm:$0xff]  ;;  %v2082_v13 = vpop.f32.mrf.mxu1 }
  0xd9   :  { %1524 = vst [vmem:[%s2983_s5 + $0x18] sm:$0xff] %v1523_v11  ;;  %1084 = vst.msk [vmem:[#allocation2 + $0x38] sm:$0xff] %vm1076_vm1, %v1035_v8  ;;  %v1034_v14 = vadd.f32 %v2576_v38, %v813_v9  ;;  %v828_v15 = vadd.f32 %v2082_v13, %v2006_v12  ;;  %1229 = vrot.lane.b32.xlu0 %v1129_v10, %s2141_s0  ;;  %v373_v18 = vpop.f32.mrf.mxu0  ;;  %v1132_v28 = vmax.f32 %v1035_v8, 0.0 }
  0xda   :  { %v1521_v17 = vld [vmem:[#allocation2 + $0x10] sm:$0xff]  ;;  %v822_v19 = vpop.f32.mrf.mxu1 }
  0xdb   :  { %1522 = vst [vmem:[%s2983_s5 + $0x10] sm:$0xff] %v1521_v17  ;;  %1083 = vst.msk [vmem:[#allocation2 + $0x30] sm:$0xff] %vm1076_vm1, %v1034_v14  ;;  %v1037_v20 = vadd.f32 %v2576_v38, %v828_v15  ;;  %v823_v21 = vadd.f32 %v822_v19, %v373_v18  ;;  %1231 = vrot.lane.b32.xlu1 %v1130_v16, %s2141_s0  ;;  %v1131_v22 = vmax.f32 %v1034_v14, 0.0  ;;  %v2009_v24 = vpop.f32.mrf.mxu0 }
  0xdc   :  { %v1527_v23 = vld [vmem:[#allocation2 + $0x28] sm:$0xff]  ;;  %v2085_v25 = vpop.f32.mrf.mxu1 }
  0xdd   :  { %1528 = vst [vmem:[%s2983_s5 + $0x28] sm:$0xff] %v1527_v23  ;;  %1086 = vst.msk [vmem:[#allocation2 + $0x48] sm:$0xff] %vm1076_vm1, %v1037_v20  ;;  %v1036_v26 = vadd.f32 %v2576_v38, %v823_v21  ;;  %v838_v27 = vadd.f32 %v2085_v25, %v2009_v24  ;;  %1233 = vrot.lane.b32.xlu0 %v1131_v22, %s2141_s0  ;;  %v383_v30 = vpop.f32.mrf.mxu0  ;;  %v1134_v41 = vmax.f32 %v1037_v20, 0.0 }
  0xde   :  { %v1525_v29 = vld [vmem:[#allocation2 + $0x20] sm:$0xff]  ;;  %v832_v31 = vpop.f32.mrf.mxu1 }
  0xdf   :  { %1526 = vst [vmem:[%s2983_s5 + $0x20] sm:$0xff] %v1525_v29  ;;  %1085 = vst.msk [vmem:[#allocation2 + $0x40] sm:$0xff] %vm1076_vm1, %v1036_v26  ;;  %v1039_v32 = vadd.f32 %v2576_v38, %v838_v27  ;;  %v833_v33 = vadd.f32 %v832_v31, %v383_v30  ;;  %1235 = vrot.lane.b32.xlu1 %v1132_v28, %s2141_s0  ;;  %v1133_v34 = vmax.f32 %v1036_v26, 0.0  ;;  %v2012_v36 = vpop.f32.mrf.mxu0 }
  0xe0   :  { %v1531_v35 = vld [vmem:[#allocation2 + $0x38] sm:$0xff]  ;;  %v2088_v37 = vpop.f32.mrf.mxu1 }
  0xe1   :  { %1532 = vst [vmem:[%s2983_s5 + $0x38] sm:$0xff] %v1531_v35  ;;  %1088 = vst.msk [vmem:[#allocation2 + $0x58] sm:$0xff] %vm1076_vm1, %v1039_v32  ;;  %v1038_v39 = vadd.f32 %v2576_v38, %v833_v33  ;;  %v848_v40 = vadd.f32 %v2088_v37, %v2012_v36  ;;  %1237 = vrot.lane.b32.xlu0 %v1133_v34, %s2141_s0  ;;  %v393_v43 = vpop.f32.mrf.mxu0  ;;  %v1136_v53 = vmax.f32 %v1039_v32, 0.0 }
  0xe2   :  { %v1529_v42 = vld [vmem:[#allocation2 + $0x30] sm:$0xff]  ;;  %v842_v44 = vpop.f32.mrf.mxu1 }
  0xe3   :  { %1530 = vst [vmem:[%s2983_s5 + $0x30] sm:$0xff] %v1529_v42  ;;  %1087 = vst.msk [vmem:[#allocation2 + $0x50] sm:$0xff] %vm1076_vm1, %v1038_v39  ;;  %v1041_v45 = vadd.f32 %v2576_v38, %v848_v40  ;;  %v843_v46 = vadd.f32 %v842_v44, %v393_v43  ;;  %1239 = vrot.lane.b32.xlu1 %v1134_v41, %s2141_s0  ;;  %v1135_v47 = vmax.f32 %v1038_v39, 0.0  ;;  %v2015_v49 = vpop.f32.mrf.mxu0 }
  0xe4   :  { %v1535_v48 = vld [vmem:[#allocation2 + $0x48] sm:$0xff]  ;;  %v2091_v50 = vpop.f32.mrf.mxu1 }
  0xe5   :  { %1536 = vst [vmem:[%s2983_s5 + $0x48] sm:$0xff] %v1535_v48  ;;  %1090 = vst.msk [vmem:[#allocation2 + $0x68] sm:$0xff] %vm1076_vm1, %v1041_v45  ;;  %v1040_v51 = vadd.f32 %v2576_v38, %v843_v46  ;;  %v858_v52 = vadd.f32 %v2091_v50, %v2015_v49  ;;  %1241 = vrot.lane.b32.xlu0 %v1135_v47, %s2141_s0  ;;  %v403_v55 = vpop.f32.mrf.mxu0  ;;  %v1138_v1 = vmax.f32 %v1041_v45, 0.0 }
  0xe6   :  { %v1533_v54 = vld [vmem:[#allocation2 + $0x40] sm:$0xff]  ;;  %v852_v56 = vpop.f32.mrf.mxu1 }
  0xe7   :  { %1534 = vst [vmem:[%s2983_s5 + $0x40] sm:$0xff] %v1533_v54  ;;  %1089 = vst.msk [vmem:[#allocation2 + $0x60] sm:$0xff] %vm1076_vm1, %v1040_v51  ;;  %v1043_v57 = vadd.f32 %v2576_v38, %v858_v52  ;;  %v853_v58 = vadd.f32 %v852_v56, %v403_v55  ;;  %1243 = vrot.lane.b32.xlu1 %v1136_v53, %s2141_s0  ;;  %v1137_v59 = vmax.f32 %v1040_v51, 0.0  ;;  %v2018_v61 = vpop.f32.mrf.mxu0 }
  0xe8   :  { %v1539_v60 = vld [vmem:[#allocation2 + $0x58] sm:$0xff]  ;;  %v2094_v62 = vpop.f32.mrf.mxu1 }
  0xe9   :  { %1540 = vst [vmem:[%s2983_s5 + $0x58] sm:$0xff] %v1539_v60  ;;  %1092 = vst.msk [vmem:[#allocation2 + $0x78] sm:$0xff] %vm1076_vm1, %v1043_v57  ;;  %v1042_v63 = vadd.f32 %v2576_v38, %v853_v58  ;;  %v868_v0 = vadd.f32 %v2094_v62, %v2018_v61  ;;  %1245 = vrot.lane.b32.xlu0 %v1137_v59, %s2141_s0  ;;  %v413_v3 = vpop.f32.mrf.mxu0  ;;  %v1140_v13 = vmax.f32 %v1043_v57, 0.0 }
  0xea   :  { %v1537_v2 = vld [vmem:[#allocation2 + $0x50] sm:$0xff]  ;;  %v862_v4 = vpop.f32.mrf.mxu1 }
  0xeb   :  { %1538 = vst [vmem:[%s2983_s5 + $0x50] sm:$0xff] %v1537_v2  ;;  %1091 = vst.msk [vmem:[#allocation2 + $0x70] sm:$0xff] %vm1076_vm1, %v1042_v63  ;;  %v1045_v5 = vadd.f32 %v2576_v38, %v868_v0  ;;  %v863_v6 = vadd.f32 %v862_v4, %v413_v3  ;;  %1247 = vrot.lane.b32.xlu1 %v1138_v1, %s2141_s0  ;;  %v1139_v7 = vmax.f32 %v1042_v63, 0.0  ;;  %v2021_v9 = vpop.f32.mrf.mxu0 }
  0xec   :  { %v1543_v8 = vld [vmem:[#allocation2 + $0x68] sm:$0xff]  ;;  %v2097_v10 = vpop.f32.mrf.mxu1 }
  0xed   :  { %1544 = vst [vmem:[%s2983_s5 + $0x68] sm:$0xff] %v1543_v8  ;;  %1094 = vst.msk [vmem:[#allocation2 + $0x88] sm:$0xff] %vm1076_vm1, %v1045_v5  ;;  %v1044_v11 = vadd.f32 %v2576_v38, %v863_v6  ;;  %v878_v12 = vadd.f32 %v2097_v10, %v2021_v9  ;;  %1249 = vrot.lane.b32.xlu0 %v1139_v7, %s2141_s0  ;;  %v423_v15 = vpop.f32.mrf.mxu0  ;;  %v1142_v25 = vmax.f32 %v1045_v5, 0.0 }
  0xee   :  { %v1541_v14 = vld [vmem:[#allocation2 + $0x60] sm:$0xff]  ;;  %v872_v16 = vpop.f32.mrf.mxu1 }
  0xef   :  { %1542 = vst [vmem:[%s2983_s5 + $0x60] sm:$0xff] %v1541_v14  ;;  %1093 = vst.msk [vmem:[#allocation2 + $0x80] sm:$0xff] %vm1076_vm1, %v1044_v11  ;;  %v1047_v17 = vadd.f32 %v2576_v38, %v878_v12  ;;  %v873_v18 = vadd.f32 %v872_v16, %v423_v15  ;;  %1251 = vrot.lane.b32.xlu1 %v1140_v13, %s2141_s0  ;;  %v1141_v19 = vmax.f32 %v1044_v11, 0.0  ;;  %v2024_v21 = vpop.f32.mrf.mxu0 }
  0xf0   :  { %v1547_v20 = vld [vmem:[#allocation2 + $0x78] sm:$0xff]  ;;  %v2100_v22 = vpop.f32.mrf.mxu1 }
  0xf1   :  { %1548 = vst [vmem:[%s2983_s5 + $0x78] sm:$0xff] %v1547_v20  ;;  %1096 = vst.msk [vmem:[#allocation2 + $0x98] sm:$0xff] %vm1076_vm1, %v1047_v17  ;;  %v1046_v23 = vadd.f32 %v2576_v38, %v873_v18  ;;  %v888_v24 = vadd.f32 %v2100_v22, %v2024_v21  ;;  %1253 = vrot.lane.b32.xlu0 %v1141_v19, %s2141_s0  ;;  %v433_v27 = vpop.f32.mrf.mxu0  ;;  %v1144_v37 = vmax.f32 %v1047_v17, 0.0 }
  0xf2   :  { %v1545_v26 = vld [vmem:[#allocation2 + $0x70] sm:$0xff]  ;;  %v882_v28 = vpop.f32.mrf.mxu1 }
  0xf3   :  { %1546 = vst [vmem:[%s2983_s5 + $0x70] sm:$0xff] %v1545_v26  ;;  %1095 = vst.msk [vmem:[#allocation2 + $0x90] sm:$0xff] %vm1076_vm1, %v1046_v23  ;;  %v1049_v29 = vadd.f32 %v2576_v38, %v888_v24  ;;  %v883_v30 = vadd.f32 %v882_v28, %v433_v27  ;;  %1255 = vrot.lane.b32.xlu1 %v1142_v25, %s2141_s0  ;;  %v1143_v31 = vmax.f32 %v1046_v23, 0.0  ;;  %v2027_v33 = vpop.f32.mrf.mxu0 }
  0xf4   :  { %v1551_v32 = vld [vmem:[#allocation2 + $0x88] sm:$0xff]  ;;  %v2103_v34 = vpop.f32.mrf.mxu1 }
  0xf5   :  { %1552 = vst [vmem:[%s2983_s5 + $0x88] sm:$0xff] %v1551_v32  ;;  %1098 = vst.msk [vmem:[#allocation2 + $0xa8] sm:$0xff] %vm1076_vm1, %v1049_v29  ;;  %v1048_v35 = vadd.f32 %v2576_v38, %v883_v30  ;;  %v898_v36 = vadd.f32 %v2103_v34, %v2027_v33  ;;  %1257 = vrot.lane.b32.xlu0 %v1143_v31, %s2141_s0  ;;  %v443_v40 = vpop.f32.mrf.mxu0  ;;  %v1146_v50 = vmax.f32 %v1049_v29, 0.0 }
  0xf6   :  { %v1549_v39 = vld [vmem:[#allocation2 + $0x80] sm:$0xff]  ;;  %v892_v41 = vpop.f32.mrf.mxu1 }
  0xf7   :  { %1550 = vst [vmem:[%s2983_s5 + $0x80] sm:$0xff] %v1549_v39  ;;  %1097 = vst.msk [vmem:[#allocation2 + $0xa0] sm:$0xff] %vm1076_vm1, %v1048_v35  ;;  %v1051_v42 = vadd.f32 %v2576_v38, %v898_v36  ;;  %v893_v43 = vadd.f32 %v892_v41, %v443_v40  ;;  %1259 = vrot.lane.b32.xlu1 %v1144_v37, %s2141_s0  ;;  %v1145_v44 = vmax.f32 %v1048_v35, 0.0  ;;  %v2030_v46 = vpop.f32.mrf.mxu0 }
  0xf8   :  { %v1555_v45 = vld [vmem:[#allocation2 + $0x98] sm:$0xff]  ;;  %v2106_v47 = vpop.f32.mrf.mxu1 }
  0xf9   :  { %1556 = vst [vmem:[%s2983_s5 + $0x98] sm:$0xff] %v1555_v45  ;;  %1100 = vst.msk [vmem:[#allocation2 + $0xb8] sm:$0xff] %vm1076_vm1, %v1051_v42  ;;  %v1050_v48 = vadd.f32 %v2576_v38, %v893_v43  ;;  %v908_v49 = vadd.f32 %v2106_v47, %v2030_v46  ;;  %1261 = vrot.lane.b32.xlu0 %v1145_v44, %s2141_s0  ;;  %v453_v52 = vpop.f32.mrf.mxu0  ;;  %v1148_v62 = vmax.f32 %v1051_v42, 0.0 }
  0xfa   :  { %v1553_v51 = vld [vmem:[#allocation2 + $0x90] sm:$0xff]  ;;  %v902_v53 = vpop.f32.mrf.mxu1 }
  0xfb   :  { %1554 = vst [vmem:[%s2983_s5 + $0x90] sm:$0xff] %v1553_v51  ;;  %1099 = vst.msk [vmem:[#allocation2 + $0xb0] sm:$0xff] %vm1076_vm1, %v1050_v48  ;;  %v1053_v54 = vadd.f32 %v2576_v38, %v908_v49  ;;  %v903_v55 = vadd.f32 %v902_v53, %v453_v52  ;;  %1263 = vrot.lane.b32.xlu1 %v1146_v50, %s2141_s0  ;;  %v1147_v56 = vmax.f32 %v1050_v48, 0.0  ;;  %v2033_v58 = vpop.f32.mrf.mxu0 }
  0xfc   :  { %v1559_v57 = vld [vmem:[#allocation2 + $0xa8] sm:$0xff]  ;;  %v2109_v59 = vpop.f32.mrf.mxu1 }
  0xfd   :  { %1560 = vst [vmem:[%s2983_s5 + $0xa8] sm:$0xff] %v1559_v57  ;;  %1102 = vst.msk [vmem:[#allocation2 + $0xc8] sm:$0xff] %vm1076_vm1, %v1053_v54  ;;  %v1052_v60 = vadd.f32 %v2576_v38, %v903_v55  ;;  %v918_v61 = vadd.f32 %v2109_v59, %v2033_v58  ;;  %1265 = vrot.lane.b32.xlu0 %v1147_v56, %s2141_s0  ;;  %v463_v0 = vpop.f32.mrf.mxu0  ;;  %v1150_v10 = vmax.f32 %v1053_v54, 0.0 }
  0xfe   :  { %v1557_v63 = vld [vmem:[#allocation2 + $0xa0] sm:$0xff]  ;;  %v912_v1 = vpop.f32.mrf.mxu1 }
  0xff   :  { %1558 = vst [vmem:[%s2983_s5 + $0xa0] sm:$0xff] %v1557_v63  ;;  %1101 = vst.msk [vmem:[#allocation2 + $0xc0] sm:$0xff] %vm1076_vm1, %v1052_v60  ;;  %v1055_v2 = vadd.f32 %v2576_v38, %v918_v61  ;;  %v913_v3 = vadd.f32 %v912_v1, %v463_v0  ;;  %1267 = vrot.lane.b32.xlu1 %v1148_v62, %s2141_s0  ;;  %v1149_v4 = vmax.f32 %v1052_v60, 0.0  ;;  %v2036_v6 = vpop.f32.mrf.mxu0 }
 0x100   :  { %v1563_v5 = vld [vmem:[#allocation2 + $0xb8] sm:$0xff]  ;;  %v2112_v7 = vpop.f32.mrf.mxu1 }
 0x101   :  { %1564 = vst [vmem:[%s2983_s5 + $0xb8] sm:$0xff] %v1563_v5  ;;  %1104 = vst.msk [vmem:[#allocation2 + $0xd8] sm:$0xff] %vm1076_vm1, %v1055_v2  ;;  %v1054_v8 = vadd.f32 %v2576_v38, %v913_v3  ;;  %v928_v9 = vadd.f32 %v2112_v7, %v2036_v6  ;;  %1269 = vrot.lane.b32.xlu0 %v1149_v4, %s2141_s0  ;;  %v473_v12 = vpop.f32.mrf.mxu0  ;;  %v1152_v22 = vmax.f32 %v1055_v2, 0.0 }
 0x102   :  { %v1561_v11 = vld [vmem:[#allocation2 + $0xb0] sm:$0xff]  ;;  %v922_v13 = vpop.f32.mrf.mxu1 }
 0x103   :  { %1562 = vst [vmem:[%s2983_s5 + $0xb0] sm:$0xff] %v1561_v11  ;;  %1103 = vst.msk [vmem:[#allocation2 + $0xd0] sm:$0xff] %vm1076_vm1, %v1054_v8  ;;  %v1057_v14 = vadd.f32 %v2576_v38, %v928_v9  ;;  %v923_v15 = vadd.f32 %v922_v13, %v473_v12  ;;  %1271 = vrot.lane.b32.xlu1 %v1150_v10, %s2141_s0  ;;  %v1151_v16 = vmax.f32 %v1054_v8, 0.0  ;;  %v2039_v18 = vpop.f32.mrf.mxu0 }
 0x104   :  { %v1567_v17 = vld [vmem:[#allocation2 + $0xc8] sm:$0xff]  ;;  %v2115_v19 = vpop.f32.mrf.mxu1 }
 0x105   :  { %1568 = vst [vmem:[%s2983_s5 + $0xc8] sm:$0xff] %v1567_v17  ;;  %1106 = vst.msk [vmem:[#allocation2 + $0xe8] sm:$0xff] %vm1076_vm1, %v1057_v14  ;;  %v1056_v20 = vadd.f32 %v2576_v38, %v923_v15  ;;  %v938_v21 = vadd.f32 %v2115_v19, %v2039_v18  ;;  %1273 = vrot.lane.b32.xlu0 %v1151_v16, %s2141_s0  ;;  %v483_v24 = vpop.f32.mrf.mxu0  ;;  %v1154_v34 = vmax.f32 %v1057_v14, 0.0 }
 0x106   :  { %v1565_v23 = vld [vmem:[#allocation2 + $0xc0] sm:$0xff]  ;;  %v932_v25 = vpop.f32.mrf.mxu1 }
 0x107   :  { %1566 = vst [vmem:[%s2983_s5 + $0xc0] sm:$0xff] %v1565_v23  ;;  %1105 = vst.msk [vmem:[#allocation2 + $0xe0] sm:$0xff] %vm1076_vm1, %v1056_v20  ;;  %v1059_v26 = vadd.f32 %v2576_v38, %v938_v21  ;;  %v933_v27 = vadd.f32 %v932_v25, %v483_v24  ;;  %1275 = vrot.lane.b32.xlu1 %v1152_v22, %s2141_s0  ;;  %v1153_v28 = vmax.f32 %v1056_v20, 0.0  ;;  %v2042_v30 = vpop.f32.mrf.mxu0 }
 0x108   :  { %v1571_v29 = vld [vmem:[#allocation2 + $0xd8] sm:$0xff]  ;;  %v2118_v31 = vpop.f32.mrf.mxu1 }
 0x109   :  { %1572 = vst [vmem:[%s2983_s5 + $0xd8] sm:$0xff] %v1571_v29  ;;  %1108 = vst.msk [vmem:[#allocation2 + $0xf8] sm:$0xff] %vm1076_vm1, %v1059_v26  ;;  %v1058_v32 = vadd.f32 %v2576_v38, %v933_v27  ;;  %v948_v33 = vadd.f32 %v2118_v31, %v2042_v30  ;;  %1277 = vrot.lane.b32.xlu0 %v1153_v28, %s2141_s0  ;;  %v493_v36 = vpop.f32.mrf.mxu0  ;;  %v1156_v47 = vmax.f32 %v1059_v26, 0.0 }
 0x10a   :  { %v1569_v35 = vld [vmem:[#allocation2 + $0xd0] sm:$0xff]  ;;  %v942_v37 = vpop.f32.mrf.mxu1 }
 0x10b   :  { %1570 = vst [vmem:[%s2983_s5 + $0xd0] sm:$0xff] %v1569_v35  ;;  %1107 = vst.msk [vmem:[#allocation2 + $0xf0] sm:$0xff] %vm1076_vm1, %v1058_v32  ;;  %v1061_v39 = vadd.f32 %v2576_v38, %v948_v33  ;;  %v943_v40 = vadd.f32 %v942_v37, %v493_v36  ;;  %1279 = vrot.lane.b32.xlu1 %v1154_v34, %s2141_s0  ;;  %v1155_v41 = vmax.f32 %v1058_v32, 0.0  ;;  %v2045_v43 = vpop.f32.mrf.mxu0 }
 0x10c   :  { %v1575_v42 = vld [vmem:[#allocation2 + $0xe8] sm:$0xff]  ;;  %v2121_v44 = vpop.f32.mrf.mxu1 }
 0x10d   :  { %1576 = vst [vmem:[%s2983_s5 + $0xe8] sm:$0xff] %v1575_v42  ;;  %1110 = vst.msk [vmem:[#allocation2 + $0x108] sm:$0xff] %vm1076_vm1, %v1061_v39  ;;  %v1060_v45 = vadd.f32 %v2576_v38, %v943_v40  ;;  %v958_v46 = vadd.f32 %v2121_v44, %v2045_v43  ;;  %1281 = vrot.lane.b32.xlu0 %v1155_v41, %s2141_s0  ;;  %v503_v49 = vpop.f32.mrf.mxu0  ;;  %v1158_v59 = vmax.f32 %v1061_v39, 0.0 }
 0x10e   :  { %v1573_v48 = vld [vmem:[#allocation2 + $0xe0] sm:$0xff]  ;;  %v952_v50 = vpop.f32.mrf.mxu1 }
 0x10f   :  { %1574 = vst [vmem:[%s2983_s5 + $0xe0] sm:$0xff] %v1573_v48  ;;  %1109 = vst.msk [vmem:[#allocation2 + $0x100] sm:$0xff] %vm1076_vm1, %v1060_v45  ;;  %v1063_v51 = vadd.f32 %v2576_v38, %v958_v46  ;;  %v953_v52 = vadd.f32 %v952_v50, %v503_v49  ;;  %1283 = vrot.lane.b32.xlu1 %v1156_v47, %s2141_s0  ;;  %v1157_v53 = vmax.f32 %v1060_v45, 0.0  ;;  %v2048_v55 = vpop.f32.mrf.mxu0 }
 0x110   :  { %v1579_v54 = vld [vmem:[#allocation2 + $0xf8] sm:$0xff]  ;;  %v2124_v56 = vpop.f32.mrf.mxu1 }
 0x111   :  { %1580 = vst [vmem:[%s2983_s5 + $0xf8] sm:$0xff] %v1579_v54  ;;  %1112 = vst.msk [vmem:[#allocation2 + $0x118] sm:$0xff] %vm1076_vm1, %v1063_v51  ;;  %v1062_v57 = vadd.f32 %v2576_v38, %v953_v52  ;;  %v968_v58 = vadd.f32 %v2124_v56, %v2048_v55  ;;  %1285 = vrot.lane.b32.xlu0 %v1157_v53, %s2141_s0  ;;  %v513_v61 = vpop.f32.mrf.mxu0  ;;  %v1160_v7 = vmax.f32 %v1063_v51, 0.0 }
 0x112   :  { %v1577_v60 = vld [vmem:[#allocation2 + $0xf0] sm:$0xff]  ;;  %v962_v62 = vpop.f32.mrf.mxu1 }
 0x113   :  { %1578 = vst [vmem:[%s2983_s5 + $0xf0] sm:$0xff] %v1577_v60  ;;  %1111 = vst.msk [vmem:[#allocation2 + $0x110] sm:$0xff] %vm1076_vm1, %v1062_v57  ;;  %v1065_v63 = vadd.f32 %v2576_v38, %v968_v58  ;;  %v963_v0 = vadd.f32 %v962_v62, %v513_v61  ;;  %1287 = vrot.lane.b32.xlu1 %v1158_v59, %s2141_s0  ;;  %v1159_v1 = vmax.f32 %v1062_v57, 0.0  ;;  %v2051_v3 = vpop.f32.mrf.mxu0 }
 0x114   :  { %v1583_v2 = vld [vmem:[#allocation2 + $0x108] sm:$0xff]  ;;  %v2127_v4 = vpop.f32.mrf.mxu1 }
 0x115   :  { %1584 = vst [vmem:[%s2983_s5 + $0x108] sm:$0xff] %v1583_v2  ;;  %1114 = vst.msk [vmem:[#allocation2 + $0x128] sm:$0xff] %vm1076_vm1, %v1065_v63  ;;  %v1064_v5 = vadd.f32 %v2576_v38, %v963_v0  ;;  %v978_v6 = vadd.f32 %v2127_v4, %v2051_v3  ;;  %1289 = vrot.lane.b32.xlu0 %v1159_v1, %s2141_s0  ;;  %v523_v9 = vpop.f32.mrf.mxu0  ;;  %v1162_v19 = vmax.f32 %v1065_v63, 0.0 }
 0x116   :  { %v1581_v8 = vld [vmem:[#allocation2 + $0x100] sm:$0xff]  ;;  %v972_v10 = vpop.f32.mrf.mxu1 }
 0x117   :  { %1582 = vst [vmem:[%s2983_s5 + $0x100] sm:$0xff] %v1581_v8  ;;  %1113 = vst.msk [vmem:[#allocation2 + $0x120] sm:$0xff] %vm1076_vm1, %v1064_v5  ;;  %v1067_v11 = vadd.f32 %v2576_v38, %v978_v6  ;;  %v973_v12 = vadd.f32 %v972_v10, %v523_v9  ;;  %1291 = vrot.lane.b32.xlu1 %v1160_v7, %s2141_s0  ;;  %v1161_v13 = vmax.f32 %v1064_v5, 0.0  ;;  %v2054_v15 = vpop.f32.mrf.mxu0 }
 0x118   :  { %v1587_v14 = vld [vmem:[#allocation2 + $0x118] sm:$0xff]  ;;  %v2130_v16 = vpop.f32.mrf.mxu1 }
 0x119   :  { %1588 = vst [vmem:[%s2983_s5 + $0x118] sm:$0xff] %v1587_v14  ;;  %v1066_v17 = vadd.f32 %v2576_v38, %v973_v12  ;;  %v988_v18 = vadd.f32 %v2130_v16, %v2054_v15  ;;  %1293 = vrot.lane.b32.xlu0 %v1161_v13, %s2141_s0  ;;  %v533_v21 = vpop.f32.mrf.mxu0  ;;  %v1164_v31 = vmax.f32 %v1067_v11, 0.0 }
 0x11a   :  { %v1585_v20 = vld [vmem:[#allocation2 + $0x110] sm:$0xff]  ;;  %v982_v22 = vpop.f32.mrf.mxu1 }
 0x11b   :  { %1586 = vst [vmem:[%s2983_s5 + $0x110] sm:$0xff] %v1585_v20  ;;  %v1069_v23 = vadd.f32 %v2576_v38, %v988_v18  ;;  %v983_v24 = vadd.f32 %v982_v22, %v533_v21  ;;  %1295 = vrot.lane.b32.xlu1 %v1162_v19, %s2141_s0  ;;  %v1163_v25 = vmax.f32 %v1066_v17, 0.0  ;;  %v2057_v27 = vpop.f32.mrf.mxu0 }
 0x11c   :  { %v1591_v26 = vld [vmem:[#allocation2 + $0x128] sm:$0xff]  ;;  %v2133_v28 = vpop.f32.mrf.mxu1 }
 0x11d   :  { %1592 = vst [vmem:[%s2983_s5 + $0x128] sm:$0xff] %v1591_v26  ;;  %v1068_v29 = vadd.f32 %v2576_v38, %v983_v24  ;;  %v998_v30 = vadd.f32 %v2133_v28, %v2057_v27  ;;  %1297 = vrot.lane.b32.xlu0 %v1163_v25, %s2141_s0  ;;  %v543_v33 = vpop.f32.mrf.mxu0  ;;  %v1166_v43 = vmax.f32 %v1069_v23, 0.0 }
 0x11e   :  { %v1589_v32 = vld [vmem:[#allocation2 + $0x120] sm:$0xff]  ;;  %v992_v34 = vpop.f32.mrf.mxu1 }
 0x11f   :  { %1590 = vst [vmem:[%s2983_s5 + $0x120] sm:$0xff] %v1589_v32  ;;  %v1071_v35 = vadd.f32 %v2576_v38, %v998_v30  ;;  %v993_v36 = vadd.f32 %v992_v34, %v543_v33  ;;  %1299 = vrot.lane.b32.xlu1 %v1164_v31, %s2141_s0  ;;  %v1165_v37 = vmax.f32 %v1068_v29, 0.0  ;;  %v2060_v39 = vpop.f32.mrf.mxu0 }
 0x120   :  { %v2136_v40 = vpop.f32.mrf.mxu1 }
 0x121   :  { %v1070_v41 = vadd.f32 %v2576_v38, %v993_v36  ;;  %v1008_v42 = vadd.f32 %v2136_v40, %v2060_v39  ;;  %1301 = vrot.lane.b32.xlu0 %v1165_v37, %s2141_s0  ;;  %v553_v44 = vpop.f32.mrf.mxu0  ;;  %v1168_v53 = vmax.f32 %v1071_v35, 0.0 }
 0x122   :  { %v1002_v45 = vpop.f32.mrf.mxu1 }
 0x123   :  { %v1073_v46 = vadd.f32 %v2576_v38, %v1008_v42  ;;  %v1003_v47 = vadd.f32 %v1002_v45, %v553_v44  ;;  %1303 = vrot.lane.b32.xlu1 %v1166_v43, %s2141_s0  ;;  %v1167_v48 = vmax.f32 %v1070_v41, 0.0  ;;  %v2063_v49 = vpop.f32.mrf.mxu0 }
 0x124   :  { %v2139_v50 = vpop.f32.mrf.mxu1 }
 0x125   :  { %v1072_v51 = vadd.f32 %v2576_v38, %v1003_v47  ;;  %v1018_v52 = vadd.f32 %v2139_v50, %v2063_v49  ;;  %1305 = vrot.lane.b32.xlu0 %v1167_v48, %s2141_s0  ;;  %v563_v54 = vpop.f32.mrf.mxu0  ;;  %v1170_v60 = vmax.f32 %v1073_v46, 0.0 }
 0x126   :  { %v1012_v55 = vpop.f32.mrf.mxu1 }
 0x127   :  { %v1075_v56 = vadd.f32 %v2576_v38, %v1018_v52  ;;  %v1013_v57 = vadd.f32 %v1012_v55, %v563_v54  ;;  %1307 = vrot.lane.b32.xlu1 %v1168_v53, %s2141_s0  ;;  %v1169_v58 = vmax.f32 %v1072_v51, 0.0 }
 0x129   :  { %v1074_v59 = vadd.f32 %v2576_v38, %v1013_v57  ;;  %1309 = vrot.lane.b32.xlu0 %v1169_v58, %s2141_s0  ;;  %v1172_v62 = vmax.f32 %v1075_v56, 0.0 }
 0x12b   :  { %1311 = vrot.lane.b32.xlu1 %v1170_v60, %s2141_s0  ;;  %v1171_v61 = vmax.f32 %v1074_v59, 0.0 }
 0x12d   :  { %1313 = vrot.lane.b32.xlu0 %v1171_v61, %s2141_s0 }
 0x12f   :  { %1315 = vrot.lane.b32.xlu1 %v1172_v62, %s2141_s0 }
 0x141   :  { %v1224_v63 = vpop.permute.xlu0 %1223 }
 0x142   :  { %1366 = vst.msk [vmem:[#allocation3 + $0x8] sm:$0xff] %vm122_vm0, %v1224_v63 }
 0x145   :  { %v1228_v0 = vpop.permute.xlu1 %1227  ;;  %v1222_v1 = vpop.permute.xlu0 %1221 }
 0x146   :  { %1368 = vst.msk [vmem:[#allocation3 + $0x18] sm:$0xff] %vm122_vm0, %v1228_v0  ;;  %1365 = vst.msk [vmem:[#allocation3] sm:$0xff] %vm122_vm0, %v1222_v1 }
 0x149   :  { %v1702_v38 = vld [vmem:[#allocation3 + $0x8] sm:$0xff]  ;;  %v1226_v2 = vpop.permute.xlu1 %1225 }
 0x14a   :  { %1703 = vst [vmem:[%s2984_s6 + $0x8] sm:$0xff] %v1702_v38  ;;  %1367 = vst.msk [vmem:[#allocation3 + $0x10] sm:$0xff] %vm122_vm0, %v1226_v2 }
 0x14b   :  { %v1230_v3 = vpop.permute.xlu0 %1229 }
 0x14c   :  { %1369 = vst.msk [vmem:[#allocation3 + $0x20] sm:$0xff] %vm122_vm0, %v1230_v3 }
 0x14d   :  { %v1706_v4 = vld [vmem:[#allocation3 + $0x18] sm:$0xff]  ;;  %v1700_v5 = vld [vmem:[#allocation3] sm:$0xff]  ;;  %v1232_v6 = vpop.permute.xlu1 %1231 }
 0x14e   :  { %1707 = vst [vmem:[%s2984_s6 + $0x18] sm:$0xff] %v1706_v4  ;;  %1701 = vst [vmem:[%s2984_s6] sm:$0xff] %v1700_v5 }
 0x14f   :  { %1370 = vst.msk [vmem:[#allocation3 + $0x28] sm:$0xff] %vm122_vm0, %v1232_v6  ;;  %v1234_v7 = vpop.permute.xlu0 %1233 }
 0x150   :  { %1371 = vst.msk [vmem:[#allocation3 + $0x30] sm:$0xff] %vm122_vm0, %v1234_v7 }
 0x151   :  { %v1704_v8 = vld [vmem:[#allocation3 + $0x10] sm:$0xff]  ;;  %v1236_v9 = vpop.permute.xlu1 %1235 }
 0x152   :  { %1705 = vst [vmem:[%s2984_s6 + $0x10] sm:$0xff] %v1704_v8  ;;  %1372 = vst.msk [vmem:[#allocation3 + $0x38] sm:$0xff] %vm122_vm0, %v1236_v9 }
 0x153   :  { %v1708_v10 = vld [vmem:[#allocation3 + $0x20] sm:$0xff]  ;;  %v1238_v11 = vpop.permute.xlu0 %1237 }
 0x154   :  { %1709 = vst [vmem:[%s2984_s6 + $0x20] sm:$0xff] %v1708_v10  ;;  %1373 = vst.msk [vmem:[#allocation3 + $0x40] sm:$0xff] %vm122_vm0, %v1238_v11 }
 0x155   :  { %v1240_v13 = vpop.permute.xlu1 %1239 }
 0x156   :  { %v1710_v12 = vld [vmem:[#allocation3 + $0x28] sm:$0xff]  ;;  %1374 = vst.msk [vmem:[#allocation3 + $0x48] sm:$0xff] %vm122_vm0, %v1240_v13 }
 0x157   :  { %1711 = vst [vmem:[%s2984_s6 + $0x28] sm:$0xff] %v1710_v12  ;;  %v1712_v14 = vld [vmem:[#allocation3 + $0x30] sm:$0xff]  ;;  %v1242_v15 = vpop.permute.xlu0 %1241 }
 0x158   :  { %1713 = vst [vmem:[%s2984_s6 + $0x30] sm:$0xff] %v1712_v14  ;;  %1375 = vst.msk [vmem:[#allocation3 + $0x50] sm:$0xff] %vm122_vm0, %v1242_v15 }
 0x159   :  { %v1714_v16 = vld [vmem:[#allocation3 + $0x38] sm:$0xff]  ;;  %v1244_v17 = vpop.permute.xlu1 %1243 }
 0x15a   :  { %1715 = vst [vmem:[%s2984_s6 + $0x38] sm:$0xff] %v1714_v16  ;;  %1376 = vst.msk [vmem:[#allocation3 + $0x58] sm:$0xff] %vm122_vm0, %v1244_v17 }
 0x15b   :  { %v1716_v18 = vld [vmem:[#allocation3 + $0x40] sm:$0xff]  ;;  %v1246_v19 = vpop.permute.xlu0 %1245 }
 0x15c   :  { %1717 = vst [vmem:[%s2984_s6 + $0x40] sm:$0xff] %v1716_v18  ;;  %1377 = vst.msk [vmem:[#allocation3 + $0x60] sm:$0xff] %vm122_vm0, %v1246_v19 }
 0x15d   :  { %v1718_v20 = vld [vmem:[#allocation3 + $0x48] sm:$0xff]  ;;  %v1248_v21 = vpop.permute.xlu1 %1247 }
 0x15e   :  { %1719 = vst [vmem:[%s2984_s6 + $0x48] sm:$0xff] %v1718_v20  ;;  %1378 = vst.msk [vmem:[#allocation3 + $0x68] sm:$0xff] %vm122_vm0, %v1248_v21 }
 0x15f   :  { %v1720_v22 = vld [vmem:[#allocation3 + $0x50] sm:$0xff]  ;;  %v1250_v23 = vpop.permute.xlu0 %1249 }
 0x160   :  { %1721 = vst [vmem:[%s2984_s6 + $0x50] sm:$0xff] %v1720_v22  ;;  %1379 = vst.msk [vmem:[#allocation3 + $0x70] sm:$0xff] %vm122_vm0, %v1250_v23 }
 0x161   :  { %v1722_v24 = vld [vmem:[#allocation3 + $0x58] sm:$0xff]  ;;  %v1252_v25 = vpop.permute.xlu1 %1251 }
 0x162   :  { %1723 = vst [vmem:[%s2984_s6 + $0x58] sm:$0xff] %v1722_v24  ;;  %1380 = vst.msk [vmem:[#allocation3 + $0x78] sm:$0xff] %vm122_vm0, %v1252_v25 }
 0x163   :  { %v1724_v26 = vld [vmem:[#allocation3 + $0x60] sm:$0xff]  ;;  %v1254_v27 = vpop.permute.xlu0 %1253 }
 0x164   :  { %1725 = vst [vmem:[%s2984_s6 + $0x60] sm:$0xff] %v1724_v26  ;;  %1381 = vst.msk [vmem:[#allocation3 + $0x80] sm:$0xff] %vm122_vm0, %v1254_v27 }
 0x165   :  { %v1726_v28 = vld [vmem:[#allocation3 + $0x68] sm:$0xff]  ;;  %v1256_v29 = vpop.permute.xlu1 %1255 }
 0x166   :  { %1727 = vst [vmem:[%s2984_s6 + $0x68] sm:$0xff] %v1726_v28  ;;  %1382 = vst.msk [vmem:[#allocation3 + $0x88] sm:$0xff] %vm122_vm0, %v1256_v29 }
 0x167   :  { %v1728_v30 = vld [vmem:[#allocation3 + $0x70] sm:$0xff]  ;;  %v1258_v31 = vpop.permute.xlu0 %1257 }
 0x168   :  { %1729 = vst [vmem:[%s2984_s6 + $0x70] sm:$0xff] %v1728_v30  ;;  %1383 = vst.msk [vmem:[#allocation3 + $0x90] sm:$0xff] %vm122_vm0, %v1258_v31 }
 0x169   :  { %v1730_v32 = vld [vmem:[#allocation3 + $0x78] sm:$0xff]  ;;  %v1260_v33 = vpop.permute.xlu1 %1259 }
 0x16a   :  { %1731 = vst [vmem:[%s2984_s6 + $0x78] sm:$0xff] %v1730_v32  ;;  %1384 = vst.msk [vmem:[#allocation3 + $0x98] sm:$0xff] %vm122_vm0, %v1260_v33 }
 0x16b   :  { %v1732_v34 = vld [vmem:[#allocation3 + $0x80] sm:$0xff]  ;;  %v1262_v35 = vpop.permute.xlu0 %1261 }
 0x16c   :  { %1733 = vst [vmem:[%s2984_s6 + $0x80] sm:$0xff] %v1732_v34  ;;  %1385 = vst.msk [vmem:[#allocation3 + $0xa0] sm:$0xff] %vm122_vm0, %v1262_v35 }
 0x16d   :  { %v1734_v36 = vld [vmem:[#allocation3 + $0x88] sm:$0xff]  ;;  %v1264_v37 = vpop.permute.xlu1 %1263 }
 0x16e   :  { %1735 = vst [vmem:[%s2984_s6 + $0x88] sm:$0xff] %v1734_v36  ;;  %1386 = vst.msk [vmem:[#allocation3 + $0xa8] sm:$0xff] %vm122_vm0, %v1264_v37 }
 0x16f   :  { %v1736_v39 = vld [vmem:[#allocation3 + $0x90] sm:$0xff]  ;;  %v1266_v40 = vpop.permute.xlu0 %1265 }
 0x170   :  { %1737 = vst [vmem:[%s2984_s6 + $0x90] sm:$0xff] %v1736_v39  ;;  %1387 = vst.msk [vmem:[#allocation3 + $0xb0] sm:$0xff] %vm122_vm0, %v1266_v40 }
 0x171   :  { %v1738_v41 = vld [vmem:[#allocation3 + $0x98] sm:$0xff]  ;;  %v1268_v42 = vpop.permute.xlu1 %1267 }
 0x172   :  { %1739 = vst [vmem:[%s2984_s6 + $0x98] sm:$0xff] %v1738_v41  ;;  %1388 = vst.msk [vmem:[#allocation3 + $0xb8] sm:$0xff] %vm122_vm0, %v1268_v42 }
 0x173   :  { %v1740_v43 = vld [vmem:[#allocation3 + $0xa0] sm:$0xff]  ;;  %v1270_v44 = vpop.permute.xlu0 %1269 }
 0x174   :  { %1741 = vst [vmem:[%s2984_s6 + $0xa0] sm:$0xff] %v1740_v43  ;;  %1389 = vst.msk [vmem:[#allocation3 + $0xc0] sm:$0xff] %vm122_vm0, %v1270_v44 }
 0x175   :  { %v1742_v45 = vld [vmem:[#allocation3 + $0xa8] sm:$0xff]  ;;  %v1272_v46 = vpop.permute.xlu1 %1271 }
 0x176   :  { %1743 = vst [vmem:[%s2984_s6 + $0xa8] sm:$0xff] %v1742_v45  ;;  %1390 = vst.msk [vmem:[#allocation3 + $0xc8] sm:$0xff] %vm122_vm0, %v1272_v46 }
 0x177   :  { %v1744_v47 = vld [vmem:[#allocation3 + $0xb0] sm:$0xff]  ;;  %v1274_v48 = vpop.permute.xlu0 %1273 }
 0x178   :  { %1745 = vst [vmem:[%s2984_s6 + $0xb0] sm:$0xff] %v1744_v47  ;;  %1391 = vst.msk [vmem:[#allocation3 + $0xd0] sm:$0xff] %vm122_vm0, %v1274_v48 }
 0x179   :  { %v1746_v49 = vld [vmem:[#allocation3 + $0xb8] sm:$0xff]  ;;  %v1276_v50 = vpop.permute.xlu1 %1275 }
 0x17a   :  { %1747 = vst [vmem:[%s2984_s6 + $0xb8] sm:$0xff] %v1746_v49  ;;  %1392 = vst.msk [vmem:[#allocation3 + $0xd8] sm:$0xff] %vm122_vm0, %v1276_v50 }
 0x17b   :  { %v1748_v51 = vld [vmem:[#allocation3 + $0xc0] sm:$0xff]  ;;  %v1278_v52 = vpop.permute.xlu0 %1277 }
 0x17c   :  { %1749 = vst [vmem:[%s2984_s6 + $0xc0] sm:$0xff] %v1748_v51  ;;  %1393 = vst.msk [vmem:[#allocation3 + $0xe0] sm:$0xff] %vm122_vm0, %v1278_v52 }
 0x17d   :  { %v1750_v53 = vld [vmem:[#allocation3 + $0xc8] sm:$0xff]  ;;  %v1280_v54 = vpop.permute.xlu1 %1279 }
 0x17e   :  { %1751 = vst [vmem:[%s2984_s6 + $0xc8] sm:$0xff] %v1750_v53  ;;  %1394 = vst.msk [vmem:[#allocation3 + $0xe8] sm:$0xff] %vm122_vm0, %v1280_v54 }
 0x17f   :  { %v1752_v55 = vld [vmem:[#allocation3 + $0xd0] sm:$0xff]  ;;  %v1282_v56 = vpop.permute.xlu0 %1281 }
 0x180   :  { %1753 = vst [vmem:[%s2984_s6 + $0xd0] sm:$0xff] %v1752_v55  ;;  %1395 = vst.msk [vmem:[#allocation3 + $0xf0] sm:$0xff] %vm122_vm0, %v1282_v56 }
 0x181   :  { %v1754_v57 = vld [vmem:[#allocation3 + $0xd8] sm:$0xff]  ;;  %v1284_v58 = vpop.permute.xlu1 %1283 }
 0x182   :  { %1755 = vst [vmem:[%s2984_s6 + $0xd8] sm:$0xff] %v1754_v57  ;;  %1396 = vst.msk [vmem:[#allocation3 + $0xf8] sm:$0xff] %vm122_vm0, %v1284_v58 }
 0x183   :  { %v1756_v59 = vld [vmem:[#allocation3 + $0xe0] sm:$0xff]  ;;  %v1286_v60 = vpop.permute.xlu0 %1285 }
 0x184   :  { %1757 = vst [vmem:[%s2984_s6 + $0xe0] sm:$0xff] %v1756_v59  ;;  %1397 = vst.msk [vmem:[#allocation3 + $0x100] sm:$0xff] %vm122_vm0, %v1286_v60 }
 0x185   :  { %v1758_v61 = vld [vmem:[#allocation3 + $0xe8] sm:$0xff]  ;;  %v1288_v62 = vpop.permute.xlu1 %1287 }
 0x186   :  { %1759 = vst [vmem:[%s2984_s6 + $0xe8] sm:$0xff] %v1758_v61  ;;  %1398 = vst.msk [vmem:[#allocation3 + $0x108] sm:$0xff] %vm122_vm0, %v1288_v62 }
 0x187   :  { %v1760_v63 = vld [vmem:[#allocation3 + $0xf0] sm:$0xff]  ;;  %v1290_v0 = vpop.permute.xlu0 %1289 }
 0x188   :  { %1761 = vst [vmem:[%s2984_s6 + $0xf0] sm:$0xff] %v1760_v63  ;;  %1399 = vst.msk [vmem:[#allocation3 + $0x110] sm:$0xff] %vm122_vm0, %v1290_v0 }
 0x189   :  { %v1762_v1 = vld [vmem:[#allocation3 + $0xf8] sm:$0xff]  ;;  %v1292_v38 = vpop.permute.xlu1 %1291 }
 0x18a   :  { %1763 = vst [vmem:[%s2984_s6 + $0xf8] sm:$0xff] %v1762_v1  ;;  %1400 = vst.msk [vmem:[#allocation3 + $0x118] sm:$0xff] %vm122_vm0, %v1292_v38 }
 0x18b   :  { %v1764_v2 = vld [vmem:[#allocation3 + $0x100] sm:$0xff]  ;;  %v1294_v3 = vpop.permute.xlu0 %1293 }
 0x18c   :  { %1765 = vst [vmem:[%s2984_s6 + $0x100] sm:$0xff] %v1764_v2  ;;  %1401 = vst.msk [vmem:[#allocation3 + $0x120] sm:$0xff] %vm122_vm0, %v1294_v3 }
 0x18d   :  { %v1766_v4 = vld [vmem:[#allocation3 + $0x108] sm:$0xff]  ;;  %v1296_v5 = vpop.permute.xlu1 %1295 }
 0x18e   :  { %1767 = vst [vmem:[%s2984_s6 + $0x108] sm:$0xff] %v1766_v4  ;;  %1402 = vst.msk [vmem:[#allocation3 + $0x128] sm:$0xff] %vm122_vm0, %v1296_v5 }
 0x18f   :  { %v1768_v6 = vld [vmem:[#allocation3 + $0x110] sm:$0xff]  ;;  %v1298_v7 = vpop.permute.xlu0 %1297 }
 0x190   :  { %1769 = vst [vmem:[%s2984_s6 + $0x110] sm:$0xff] %v1768_v6 }
 0x191   :  { %v1770_v8 = vld [vmem:[#allocation3 + $0x118] sm:$0xff]  ;;  %v1300_v9 = vpop.permute.xlu1 %1299 }
 0x192   :  { %1771 = vst [vmem:[%s2984_s6 + $0x118] sm:$0xff] %v1770_v8 }
 0x193   :  { %v1772_v10 = vld [vmem:[#allocation3 + $0x120] sm:$0xff]  ;;  %v1302_v11 = vpop.permute.xlu0 %1301 }
 0x194   :  { %1773 = vst [vmem:[%s2984_s6 + $0x120] sm:$0xff] %v1772_v10 }
 0x195   :  { %v1774_v12 = vld [vmem:[#allocation3 + $0x128] sm:$0xff]  ;;  %v1304_v13 = vpop.permute.xlu1 %1303 }
 0x196   :  { %1775 = vst [vmem:[%s2984_s6 + $0x128] sm:$0xff] %v1774_v12 }
 0x197   :  { %v1306_v14 = vpop.permute.xlu0 %1305 }
 0x199   :  { %v1308_v15 = vpop.permute.xlu1 %1307 }
 0x19b   :  { %v1310_v16 = vpop.permute.xlu0 %1309 }
 0x19d   :  { %v1312_v17 = vpop.permute.xlu1 %1311 }
 0x19f   :  { %v1314_v18 = vpop.permute.xlu0 %1313 }
 0x1a1   :  { %v1316_v19 = vpop.permute.xlu1 %1315 }

</bundles_post_ra>
